<compile_context>
chip_gen: v5e
topology: v5e:2x2
jax: 0.10.0
libtpu: 0.0.40
codegen_flags: <defaults>
</compile_context>

<pallas_src>
import functools

import jax
import jax.numpy as jnp
from jax import lax
from jax.experimental import pallas as pl
from jax.experimental.pallas import tpu as pltpu

BINS = 50
ALPHA = 2
BINS_PAD = 56            # 50 padded to a sublane multiple
LANES = 128
SUBLANES = 8
MAX_TILE_ROWS = 1024     # 1024 rows * 128 lanes * 4 B = 512 KiB f32 per tile


def _renyi_hist_kernel(scale_ref, x_ref, o_ref, hist_ref, *,
                       tile_rows, n_valid, n_total):
    """Row-tiled histogram + Renyi finalize.

    scale_ref: SMEM (2,) f32 = [xmin, bins/(xmax-xmin)]
    x_ref:     VMEM (tile_rows, 128) tile of the flattened batch-0 slab
    o_ref:     SMEM (1, 1) f32 output scalar
    hist_ref:  VMEM (BINS_PAD, 128) int32 per-(bin, lane) accumulator
    """
    t = pl.program_id(0)

    @pl.when(t == 0)
    def _():
        hist_ref[...] = jnp.zeros_like(hist_ref)

    xmin = scale_ref[0]
    scale = scale_ref[1]
    bins2d = lax.broadcasted_iota(jnp.int32, (BINS_PAD, LANES), 0)

    n_chunks = tile_rows // SUBLANES
    unroll = 4 if n_chunks % 4 == 0 else 1

    def chunk_body(c, partial):
        r0 = pl.multiple_of(c * SUBLANES, SUBLANES)
        # Load + cast one (8, 128) vreg worth of data at a time: no slab-sized
        # idx/mask intermediates, and bf16 sources stay compact in VMEM.
        chunk = x_ref[pl.ds(r0, SUBLANES), :].astype(jnp.float32)
        idx = jnp.clip(((chunk - xmin) * scale).astype(jnp.int32), 0, BINS - 1)
        for r in range(SUBLANES):
            # Sublane broadcast (XLU) + compare/select/add (VALU) per vreg.
            hit = (idx[r:r + 1, :] == bins2d).astype(jnp.int32)
            partial = partial + hit
        return partial

    partial = lax.fori_loop(0, n_chunks, chunk_body,
                            jnp.zeros((BINS_PAD, LANES), jnp.int32),
                            unroll=unroll)
    hist_ref[...] = hist_ref[...] + partial

    @pl.when(t == pl.num_programs(0) - 1)
    def _():
        # One cross-lane reduce -> exact per-bin int32 counts.
        cnt = jnp.sum(hist_ref[...], axis=1, keepdims=True)      # (BINS_PAD, 1)
        # Remove the wrapper's zero padding: it lands in exactly the bin the
        # vectorized path assigns to 0.0 (same subtract/mul/trunc/clip).
        pad_idx = jnp.clip(
            ((jnp.float32(0.0) - xmin) * scale).astype(jnp.int32), 0, BINS - 1)
        bin_ids = lax.broadcasted_iota(jnp.int32, (BINS_PAD, 1), 0)
        cnt = cnt - jnp.where(bin_ids == pad_idx,
                              jnp.int32(n_total - n_valid), jnp.int32(0))
        p = cnt.astype(jnp.float32)
        # sum(prob**alpha) = sum(cnt**alpha) / total**alpha   (alpha = 2).
        s = jnp.sum(p * p) * jnp.float32(1.0 / (float(n_valid) ** ALPHA))
        renyi = jnp.float32(1.0 / (1.0 - ALPHA)) * jnp.log2(s)
        # .mean() of a scalar is the scalar itself.
        o_ref[0, 0] = renyi


def calculate_renyi_entropy(time_freq_map):
    """JAX/Pallas equivalent of Calculate_renyi_entropy(bins=50, alpha=2)."""
    shape = time_freq_map.shape
    n = 1
    for d in shape[1:]:
        n *= int(d)

    # Slice out batch 0 BEFORE any pad/reshape so the other batch elements are
    # never copied or padded in HBM.
    x0 = time_freq_map[0].reshape(n)

    # torch.histc default min=max=0 -> use the data's own min/max; one scalar
    # scale so the kernel does one subtract + one multiply per element.
    xmin = jnp.min(x0).astype(jnp.float32)
    xmax = jnp.max(x0).astype(jnp.float32)
    scale = jnp.where(xmax > xmin, jnp.float32(BINS) / (xmax - xmin),
                      jnp.float32(1.0))
    scale_arr = jnp.stack([xmin, scale])

    # Lane/sublane-dense (rows, 128) slab, row-tiled for the grid.
    rows = pl.cdiv(n, LANES)
    rows = pl.cdiv(rows, SUBLANES) * SUBLANES
    tile_rows = min(MAX_TILE_ROWS, rows)
    rows = pl.cdiv(rows, tile_rows) * tile_rows
    n_pad = rows * LANES
    num_tiles = rows // tile_rows

    if n_pad != n:
        x0 = jnp.pad(x0, (0, n_pad - n))
    x0 = x0.reshape(rows, LANES)        # source dtype; cast happens per chunk

    kernel = functools.partial(_renyi_hist_kernel, tile_rows=tile_rows,
                               n_valid=n, n_total=n_pad)
    out = pl.pallas_call(
        kernel,
        out_shape=jax.ShapeDtypeStruct((1, 1), jnp.float32),
        grid=(num_tiles,),
        in_specs=[
            pl.BlockSpec(memory_space=pltpu.MemorySpace.SMEM),
            pl.BlockSpec((tile_rows, LANES), lambda t: (t, 0)),
        ],
        out_specs=pl.BlockSpec(memory_space=pltpu.MemorySpace.SMEM),
        scratch_shapes=[pltpu.VMEM((BINS_PAD, LANES), jnp.int32)],
        compiler_params=pltpu.CompilerParams(
            dimension_semantics=("arbitrary",)),
    )(scale_arr, x0)
    return out[0, 0]


if __name__ == "__main__":
    key = jax.random.PRNGKey(0)
    # NCHW input consistent with a small time-frequency map.
    x = jax.random.normal(key, (2, 4, 16, 16), dtype=jnp.float32)
    result = calculate_renyi_entropy(x)
    jax.block_until_ready(result)
    print("KERNEL_OK")
</pallas_src>

<mosaic_0001>
module attributes {stable_mosaic.version = 11 : i64} {
  func.func @_renyi_hist_kernel(%arg0: i32, %arg1: memref<2xf32, #tpu.memory_space<smem>>, %arg2: memref<8x128xf32, #tpu.memory_space<vmem>>, %arg3: memref<1x1xf32, #tpu.memory_space<smem>>, %arg4: memref<56x128xi32, #tpu.memory_space<vmem>>) attributes {dimension_semantics = [#tpu.dimension_semantics<arbitrary>], iteration_bounds = array<i64: 1>, scalar_prefetch = 0 : i64, scratch_operands = 1 : i64, tpu.core_type = #tpu.core_type<tc>, window_params = [{transform_indices = @transform_0, window_bounds = array<i64: 2>}, {transform_indices = @transform_1, window_bounds = array<i64: 8, 128>}, {transform_indices = @transform_2, window_bounds = array<i64: 1, 1>}]} {
    %c0_i32 = arith.constant 0 : i32
    %0 = arith.cmpi eq, %arg0, %c0_i32 : i32
    %1 = arith.extui %0 : i1 to i32
    %c0_i32_0 = arith.constant 0 : i32
    %2 = arith.cmpi ne, %1, %c0_i32_0 : i32
    scf.if %2 {
      %c0_i32_11 = arith.constant 0 : i32
      %66 = vector.broadcast %c0_i32_11 : i32 to vector<56x128xi32>
      %c0_12 = arith.constant 0 : index
      %c0_13 = arith.constant 0 : index
      %67 = vector.load %arg4[%c0_12, %c0_13] : memref<56x128xi32, #tpu.memory_space<vmem>>, vector<56x128xi32>
      tpu.vector_store %arg4[%c0_12, %c0_13], %66 {strides = array<i32>} : memref<56x128xi32, #tpu.memory_space<vmem>>, vector<56x128xi32>,
    } else {
    }
    %c0 = arith.constant 0 : index
    %3 = memref.load %arg1[%c0] : memref<2xf32, #tpu.memory_space<smem>>
    %c1 = arith.constant 1 : index
    %4 = memref.load %arg1[%c1] : memref<2xf32, #tpu.memory_space<smem>>
    %5 = tpu.iota {dimensions = array<i32: 0>} : vector<56x128xi32>
    %c0_i32_1 = arith.constant 0 : i32
    %6 = vector.broadcast %c0_i32_1 : i32 to vector<56x128xi32>
    %c0_i32_2 = arith.constant 0 : i32
    %c8_i32 = arith.constant 8 : i32
    %7 = arith.muli %c0_i32_2, %c8_i32 : i32
    %8 = tpu.assume_multiple %7, 8 : i32
    %9 = arith.index_cast %8 : i32 to index
    %c0_3 = arith.constant 0 : index
    %10 = vector.load %arg2[%9, %c0_3] : memref<8x128xf32, #tpu.memory_space<vmem>>, vector<8x128xf32>
    %11 = vector.broadcast %3 : f32 to vector<8x128xf32>
    %12 = arith.subf %10, %11 : vector<8x128xf32>
    %13 = vector.broadcast %4 : f32 to vector<8x128xf32>
    %14 = arith.mulf %12, %13 : vector<8x128xf32>
    %15 = arith.fptosi %14 : vector<8x128xf32> to vector<8x128xi32>
    %c0_i32_4 = arith.constant 0 : i32
    %c49_i32 = arith.constant 49 : i32
    %16 = vector.broadcast %c0_i32_4 : i32 to vector<8x128xi32>
    %17 = arith.maxsi %16, %15 : vector<8x128xi32>
    %18 = vector.broadcast %c49_i32 : i32 to vector<8x128xi32>
    %19 = arith.minsi %18, %17 : vector<8x128xi32>
    %20 = vector.extract_strided_slice %19 {offsets = [0, 0], sizes = [1, 128], strides = [1, 1]} : vector<8x128xi32> to vector<1x128xi32>
    %21 = vector.broadcast %20 : vector<1x128xi32> to vector<56x128xi32>
    %22 = arith.cmpi eq, %21, %5 : vector<56x128xi32>
    %23 = arith.extui %22 : vector<56x128xi1> to vector<56x128xi32>
    %24 = arith.addi %6, %23 : vector<56x128xi32>
    %25 = vector.extract_strided_slice %19 {offsets = [1, 0], sizes = [1, 128], strides = [1, 1]} : vector<8x128xi32> to vector<1x128xi32>
    %26 = vector.broadcast %25 : vector<1x128xi32> to vector<56x128xi32>
    %27 = arith.cmpi eq, %26, %5 : vector<56x128xi32>
    %28 = arith.extui %27 : vector<56x128xi1> to vector<56x128xi32>
    %29 = arith.addi %24, %28 : vector<56x128xi32>
    %30 = vector.extract_strided_slice %19 {offsets = [2, 0], sizes = [1, 128], strides = [1, 1]} : vector<8x128xi32> to vector<1x128xi32>
    %31 = vector.broadcast %30 : vector<1x128xi32> to vector<56x128xi32>
    %32 = arith.cmpi eq, %31, %5 : vector<56x128xi32>
    %33 = arith.extui %32 : vector<56x128xi1> to vector<56x128xi32>
    %34 = arith.addi %29, %33 : vector<56x128xi32>
    %35 = vector.extract_strided_slice %19 {offsets = [3, 0], sizes = [1, 128], strides = [1, 1]} : vector<8x128xi32> to vector<1x128xi32>
    %36 = vector.broadcast %35 : vector<1x128xi32> to vector<56x128xi32>
    %37 = arith.cmpi eq, %36, %5 : vector<56x128xi32>
    %38 = arith.extui %37 : vector<56x128xi1> to vector<56x128xi32>
    %39 = arith.addi %34, %38 : vector<56x128xi32>
    %40 = vector.extract_strided_slice %19 {offsets = [4, 0], sizes = [1, 128], strides = [1, 1]} : vector<8x128xi32> to vector<1x128xi32>
    %41 = vector.broadcast %40 : vector<1x128xi32> to vector<56x128xi32>
    %42 = arith.cmpi eq, %41, %5 : vector<56x128xi32>
    %43 = arith.extui %42 : vector<56x128xi1> to vector<56x128xi32>
    %44 = arith.addi %39, %43 : vector<56x128xi32>
    %45 = vector.extract_strided_slice %19 {offsets = [5, 0], sizes = [1, 128], strides = [1, 1]} : vector<8x128xi32> to vector<1x128xi32>
    %46 = vector.broadcast %45 : vector<1x128xi32> to vector<56x128xi32>
    %47 = arith.cmpi eq, %46, %5 : vector<56x128xi32>
    %48 = arith.extui %47 : vector<56x128xi1> to vector<56x128xi32>
    %49 = arith.addi %44, %48 : vector<56x128xi32>
    %50 = vector.extract_strided_slice %19 {offsets = [6, 0], sizes = [1, 128], strides = [1, 1]} : vector<8x128xi32> to vector<1x128xi32>
    %51 = vector.broadcast %50 : vector<1x128xi32> to vector<56x128xi32>
    %52 = arith.cmpi eq, %51, %5 : vector<56x128xi32>
    %53 = arith.extui %52 : vector<56x128xi1> to vector<56x128xi32>
    %54 = arith.addi %49, %53 : vector<56x128xi32>
    %55 = vector.extract_strided_slice %19 {offsets = [7, 0], sizes = [1, 128], strides = [1, 1]} : vector<8x128xi32> to vector<1x128xi32>
    %56 = vector.broadcast %55 : vector<1x128xi32> to vector<56x128xi32>
    %57 = arith.cmpi eq, %56, %5 : vector<56x128xi32>
    %58 = arith.extui %57 : vector<56x128xi1> to vector<56x128xi32>
    %59 = arith.addi %54, %58 : vector<56x128xi32>
    %c1_i32 = arith.constant 1 : i32
    %c0_5 = arith.constant 0 : index
    %c0_6 = arith.constant 0 : index
    %60 = vector.load %arg4[%c0_5, %c0_6] : memref<56x128xi32, #tpu.memory_space<vmem>>, vector<56x128xi32>
    %61 = arith.addi %60, %59 : vector<56x128xi32>
    %c0_7 = arith.constant 0 : index
    %c0_8 = arith.constant 0 : index
    %62 = vector.load %arg4[%c0_7, %c0_8] : memref<56x128xi32, #tpu.memory_space<vmem>>, vector<56x128xi32>
    tpu.vector_store %arg4[%c0_7, %c0_8], %61 {strides = array<i32>} : memref<56x128xi32, #tpu.memory_space<vmem>>, vector<56x128xi32>,
    %c0_i32_9 = arith.constant 0 : i32
    %63 = arith.cmpi eq, %arg0, %c0_i32_9 : i32
    %64 = arith.extui %63 : i1 to i32
    %c0_i32_10 = arith.constant 0 : i32
    %65 = arith.cmpi ne, %64, %c0_i32_10 : i32
    scf.if %65 {
      %c0_11 = arith.constant 0 : index
      %c0_12 = arith.constant 0 : index
      %66 = vector.load %arg4[%c0_11, %c0_12] : memref<56x128xi32, #tpu.memory_space<vmem>>, vector<56x128xi32>
      %cst = arith.constant dense<0> : vector<56xi32>
      %67 = vector.multi_reduction <add>, %66, %cst [1] : vector<56x128xi32> to vector<56xi32>
      %68 = vector.shape_cast %67 : vector<56xi32> to vector<56x1xi32>
      %cst_13 = arith.constant 0.000000e+00 : f32
      %69 = arith.subf %cst_13, %3 : f32
      %70 = arith.mulf %69, %4 : f32
      %71 = arith.fptosi %70 : f32 to i32
      %c0_i32_14 = arith.constant 0 : i32
      %c49_i32_15 = arith.constant 49 : i32
      %72 = arith.maxsi %c0_i32_14, %71 : i32
      %73 = arith.minsi %c49_i32_15, %72 : i32
      %74 = tpu.iota {dimensions = array<i32: 0>} : vector<56x1xi32>
      %75 = vector.broadcast %73 : i32 to vector<56x1xi32>
      %76 = arith.cmpi eq, %74, %75 : vector<56x1xi32>
      %c0_i32_16 = arith.constant 0 : i32
      %c0_i32_17 = arith.constant 0 : i32
      %77 = vector.broadcast %c0_i32_16 : i32 to vector<56x1xi32>
      %78 = vector.broadcast %c0_i32_17 : i32 to vector<56x1xi32>
      %79 = arith.select %76, %77, %78 : vector<56x1xi1>, vector<56x1xi32>
      %80 = arith.subi %68, %79 : vector<56x1xi32>
      %81 = arith.sitofp %80 : vector<56x1xi32> to vector<56x1xf32>
      %82 = arith.mulf %81, %81 : vector<56x1xf32>
      %83 = vector.shape_cast %82 : vector<56x1xf32> to vector<1x56x1xf32>
      %cst_18 = arith.constant dense<0.000000e+00> : vector<1xf32>
      %84 = vector.multi_reduction <add>, %83, %cst_18 [1, 2] : vector<1x56x1xf32> to vector<1xf32>
      %85 = vector.shape_cast %84 : vector<1xf32> to vector<1x1x1xf32>
      %86 = vector.extract %85[0, 0, 0] : f32 from vector<1x1x1xf32>
      %cst_19 = arith.constant 9.53674316E-7 : f32
      %87 = arith.mulf %86, %cst_19 : f32
      %88 = math.log %87 : f32
      %cst_20 = arith.constant 2.000000e+00 : f32
      %89 = math.log %cst_20 : f32
      %90 = arith.divf %88, %89 : f32
      %cst_21 = arith.constant -1.000000e+00 : f32
      %91 = arith.mulf %cst_21, %90 : f32
      %c0_22 = arith.constant 0 : index
      %c0_23 = arith.constant 0 : index
      %92 = memref.load %arg3[%c0_22, %c0_23] : memref<1x1xf32, #tpu.memory_space<smem>>
      memref.store %91, %arg3[%c0_22, %c0_23] : memref<1x1xf32, #tpu.memory_space<smem>>
    } else {
    }
    return
  }
  func.func @transform_0(%arg0: i32) -> i32 {
    %c0_i32 = arith.constant 0 : i32
    %c0_i32_0 = arith.constant 0 : i32
    return %c0_i32 : i32
  }
  func.func @transform_1(%arg0: i32) -> (i32, i32) {
    %c0_i32 = arith.constant 0 : i32
    %c0_i32_0 = arith.constant 0 : i32
    return %arg0, %c0_i32 : i32, i32
  }
  func.func @transform_2(%arg0: i32) -> (i32, i32) {
    %c0_i32 = arith.constant 0 : i32
    %c0_i32_0 = arith.constant 0 : i32
    %c0_i32_1 = arith.constant 0 : i32
    return %c0_i32, %c0_i32_0 : i32, i32
  }
}

</mosaic_0001>

<bundles_post_ra>
// kernel: tpu_custom_call.1
= control target key start
LH: loop header
LB: loop body
LE: loop exit
PB: predicated region body
PF: predicated region fallthrough
CT: control target
= control target key end

     0   :  { %7 = vsyncpa [#allocation5], 0  ;;  %s736_s0 = inlined_call_operand.hbm [shape: f32[2], index: 0, kind: input, shape index: {}]   ;;  %s737_s1 = inlined_call_operand.hbm [shape: f32[8,128], index: 1, kind: input, shape index: {}]   ;;  %s738_s2 = inlined_call_operand.hbm [shape: f32[1,1], index: 2, kind: output, shape index: {}]  }
   0x1   :  { %8 = vsyncpa [#allocation4], 0 }
   0x2   :  { %9 = vsyncpa [#allocation6], 0  ;;  %s15_s11 = sshll.u32 %s736_s0, 4  ;;  %s24_s14 = sshll.u32 %s737_s1, 4  ;;  %s16_s11 = int_to_ptr.hbm [resolvable:$true] %s15_s11  ;;  %s25_s14 = int_to_ptr.hbm [resolvable:$true] %s24_s14 }
   0x3   :  { %s500_s15 = smov [#allocation3]   ;;  %s501_s16 = smov [#allocation7]  }
   0x4   :  { %18 = dma.hbm_to_smem %s16_s11, 16, %s500_s15, [#allocation5]  }
   0x5   :  { %s26_s17 = sshll.u32 %s501_s16, 4  ;;  %s27_s17 = int_to_ptr.vmem [resolvable:$true] %s26_s17 }
   0x6   :  { %29 = dma.hbm_to_vmem [thread:$0]  %s25_s14, 128, %s27_s17, [#allocation4]  }
   0x7   :  { %494 = dma.done.wait [#allocation5], 16  }
   0x8   :  { %495 = vsyncadd [#allocation5], 4294967280 }
   0x9   :  { %496 = dma.done.wait [#allocation4], 128  }
   0xa   :  { %497 = vsyncadd [#allocation4], 4294967168 }
   0xb   :  { %38 = sfence }
   0xc   :  { %s50_s18 = sld [smem:[#allocation3]]  ;;  %v60_v0 = vld [vmem:[#allocation7] sm:$0xff]  ;;  %v52_v5 = vlaneseq  ;;  %v502_v25 = vmov 0   ;;  %s413_s23 = sshll.u32 %s738_s2, 4  ;;  %s414_s23 = int_to_ptr.hbm [resolvable:$true] %s413_s23 }
   0xd   :  { %s425_s19 = sld [smem:[#allocation3 + $0x1]]  ;;  %s504_s27 = smov [#allocation8]  }
   0xe   :  { %v526_v9 = vshrl.u32 %v52_v5, 7 }
  0x10   :  { %v529_v12 = vadd.s32 16, %v526_v9  ;;  %v532_v14 = vadd.s32 8, %v526_v9  ;;  %v535_v15 = vadd.s32 24, %v526_v9  ;;  %v538_v16 = vadd.s32 32, %v526_v9 }
  0x11   :  { %v568_v29 = vadd.s32 40, %v526_v9 }
  0x12   :  { %v61_v1 = vstv %s50_s18 }
  0x13   :  { %v62_v2 = vsub.f32 %v60_v0, %v61_v1  ;;  %v63_v3 = vstv %s425_s19 }
  0x15   :  { %v64_v4 = vmul.f32 %v63_v3, %v62_v2 }
  0x17   :  { %vm426_vm0 = vcmp.lt.s32.totalorder %v64_v4, 0  ;;  %v427_v6 = vceil.f32 %v64_v4  ;;  %v428_v7 = vfloor.f32 %v64_v4 }
  0x19   :  { %v429_v8 = vsel %vm426_vm0, %v427_v6, %v428_v7 }
  0x1a   :  { %v430_v10 = vcvt.f32.s32 %v429_v8 }
  0x1c   :  { %vm66_vm1 = vcmp.gt.s32.totalorder %v430_v10, 0 }
  0x1d   :  { %v67_v11 = vsel %vm66_vm1, %v430_v10, 0 }
  0x1e   :  { %vm68_vm2 = vcmp.lt.s32.totalorder %v67_v11, 49 }
  0x1f   :  { %v69_v13 = vsel %vm68_vm2, %v67_v11, 49 }
  0x20   :  { %v540_v17 = vperm.slane %v69_v13, 0  ;;  %v542_v18 = vperm.slane %v69_v13, 1  ;;  %v544_v19 = vperm.slane %v69_v13, 2  ;;  %v546_v20 = vperm.slane %v69_v13, 3 }
  0x21   :  { %v548_v21 = vperm.slane %v69_v13, 4  ;;  %v550_v22 = vperm.slane %v69_v13, 5  ;;  %v552_v23 = vperm.slane %v69_v13, 6  ;;  %v554_v24 = vperm.slane %v69_v13, 7 }
  0x22   :  { %vm71_vm3 = vcmp.eq.s32.totalorder %v540_v17, %v526_v9  ;;  %vm86_vm4 = vcmp.eq.s32.totalorder %v542_v18, %v526_v9  ;;  %vm108_vm5 = vcmp.eq.s32.totalorder %v544_v19, %v526_v9  ;;  %vm130_vm6 = vcmp.eq.s32.totalorder %v546_v20, %v526_v9 }
  0x23   :  { %v78_v26 = vsel %vm71_vm3, 1, %v502_v25  ;;  %v93_v27 = vsel %vm86_vm4, 1, %v502_v25  ;;  %v115_v28 = vsel %vm108_vm5, 1, %v502_v25  ;;  %vm152_vm7 = vcmp.eq.s32.totalorder %v548_v21, %v526_v9 }
  0x24   :  { %v100_v30 = vadd.s32 %v93_v27, %v78_v26  ;;  %vm174_vm8 = vcmp.eq.s32.totalorder %v550_v22, %v526_v9  ;;  %vm196_vm9 = vcmp.eq.s32.totalorder %v552_v23, %v526_v9  ;;  %v137_v31 = vsel %vm130_vm6, 1, %v502_v25 }
  0x25   :  { %v159_v32 = vsel %vm152_vm7, 1, %v502_v25  ;;  %v181_v33 = vsel %vm174_vm8, 1, %v502_v25  ;;  %vm218_vm10 = vcmp.eq.s32.totalorder %v554_v24, %v526_v9  ;;  %v203_v35 = vsel %vm196_vm9, 1, %v502_v25 }
  0x26   :  { %v122_v34 = vadd.s32 %v115_v28, %v100_v30  ;;  %vm73_vm11 = vcmp.eq.s32.totalorder %v540_v17, %v529_v12  ;;  %vm88_vm12 = vcmp.eq.s32.totalorder %v542_v18, %v529_v12  ;;  %vm110_vm13 = vcmp.eq.s32.totalorder %v544_v19, %v529_v12 }
  0x27   :  { %v80_v36 = vsel %vm73_vm11, 1, %v502_v25  ;;  %v95_v37 = vsel %vm88_vm12, 1, %v502_v25  ;;  %vm132_vm14 = vcmp.eq.s32.totalorder %v546_v20, %v529_v12  ;;  %v225_v39 = vsel %vm218_vm10, 1, %v502_v25 }
  0x28   :  { %v144_v38 = vadd.s32 %v137_v31, %v122_v34  ;;  %v102_v40 = vadd.s32 %v95_v37, %v80_v36  ;;  %v117_v41 = vsel %vm110_vm13, 1, %v502_v25  ;;  %v139_v42 = vsel %vm132_vm14, 1, %v502_v25 }
  0x29   :  { %vm154_vm15 = vcmp.eq.s32.totalorder %v548_v21, %v529_v12  ;;  %vm176_vm0 = vcmp.eq.s32.totalorder %v550_v22, %v529_v12  ;;  %vm198_vm1 = vcmp.eq.s32.totalorder %v552_v23, %v529_v12  ;;  %vm220_vm2 = vcmp.eq.s32.totalorder %v554_v24, %v529_v12 }
  0x2a   :  { %v166_v43 = vadd.s32 %v159_v32, %v144_v38  ;;  %v124_v44 = vadd.s32 %v117_v41, %v102_v40  ;;  %v161_v45 = vsel %vm154_vm15, 1, %v502_v25  ;;  %v183_v46 = vsel %vm176_vm0, 1, %v502_v25 }
  0x2b   :  { %v205_v47 = vsel %vm198_vm1, 1, %v502_v25  ;;  %vm72_vm3 = vcmp.eq.s32.totalorder %v540_v17, %v532_v14  ;;  %vm87_vm4 = vcmp.eq.s32.totalorder %v542_v18, %v532_v14  ;;  %vm109_vm5 = vcmp.eq.s32.totalorder %v544_v19, %v532_v14 }
  0x2c   :  { %v188_v48 = vadd.s32 %v181_v33, %v166_v43  ;;  %v146_v49 = vadd.s32 %v139_v42, %v124_v44  ;;  %v79_v50 = vsel %vm72_vm3, 1, %v502_v25  ;;  %v94_v51 = vsel %vm87_vm4, 1, %v502_v25 }
  0x2d   :  { %v101_v52 = vadd.s32 %v94_v51, %v79_v50  ;;  %vm131_vm6 = vcmp.eq.s32.totalorder %v546_v20, %v532_v14  ;;  %vm153_vm7 = vcmp.eq.s32.totalorder %v548_v21, %v532_v14  ;;  %v116_v55 = vsel %vm109_vm5, 1, %v502_v25 }
  0x2e   :  { %v210_v53 = vadd.s32 %v203_v35, %v188_v48  ;;  %v168_v54 = vadd.s32 %v161_v45, %v146_v49  ;;  %v138_v56 = vsel %vm131_vm6, 1, %v502_v25  ;;  %v227_v57 = vsel %vm220_vm2, 1, %v502_v25 }
  0x2f   :  { %v123_v58 = vadd.s32 %v116_v55, %v101_v52  ;;  %vm175_vm8 = vcmp.eq.s32.totalorder %v550_v22, %v532_v14  ;;  %vm197_vm9 = vcmp.eq.s32.totalorder %v552_v23, %v532_v14  ;;  %v160_v61 = vsel %vm153_vm7, 1, %v502_v25 }
  0x30   :  { %v232_v59 = vadd.s32 %v225_v39, %v210_v53  ;;  %v190_v60 = vadd.s32 %v183_v46, %v168_v54  ;;  %v182_v62 = vsel %vm175_vm8, 1, %v502_v25  ;;  %v204_v0 = vsel %vm197_vm9, 1, %v502_v25 }
  0x31   :  { %v145_v63 = vadd.s32 %v138_v56, %v123_v58  ;;  %vm74_vm10 = vcmp.eq.s32.totalorder %v540_v17, %v535_v15  ;;  %vm89_vm11 = vcmp.eq.s32.totalorder %v542_v18, %v535_v15  ;;  %vm219_vm12 = vcmp.eq.s32.totalorder %v554_v24, %v532_v14 }
  0x32   :  { %v271_v1 = vshrl.u32 %v232_v59, 16  ;;  %v270_v2 = vand.u32 65535, %v232_v59  ;;  %v212_v3 = vadd.s32 %v205_v47, %v190_v60  ;;  %v81_v5 = vsel %vm74_vm10, 1, %v502_v25 }
  0x33   :  { %v167_v4 = vadd.s32 %v160_v61, %v145_v63  ;;  %v96_v6 = vsel %vm89_vm11, 1, %v502_v25  ;;  %vm111_vm13 = vcmp.eq.s32.totalorder %v544_v19, %v535_v15  ;;  %vm133_vm14 = vcmp.eq.s32.totalorder %v546_v20, %v535_v15 }
  0x34   :  { %v273_v7 = vcvt.s32.f32 %v271_v1  ;;  %v272_v8 = vcvt.s32.f32 %v270_v2  ;;  %v234_v10 = vadd.s32 %v227_v57, %v212_v3  ;;  %v103_v11 = vadd.s32 %v96_v6, %v81_v5 }
  0x35   :  { %v189_v12 = vadd.s32 %v182_v62, %v167_v4  ;;  %v118_v13 = vsel %vm111_vm13, 1, %v502_v25  ;;  %vm155_vm15 = vcmp.eq.s32.totalorder %v548_v21, %v535_v15  ;;  %v226_v27 = vsel %vm219_vm12, 1, %v502_v25 }
  0x36   :  { %276 = vadd.xlane.f32.xlu0 %v273_v7  ;;  %274 = vadd.xlane.f32.xlu1 %v272_v8  ;;  %v295_v26 = vshrl.u32 %v234_v10, 16  ;;  %v125_v28 = vadd.s32 %v118_v13, %v103_v11  ;;  %v140_v30 = vsel %vm133_vm14, 1, %v502_v25  ;;  %v162_v32 = vsel %vm155_vm15, 1, %v502_v25 }
  0x37   :  { %v211_v31 = vadd.s32 %v204_v0, %v189_v12  ;;  %vm177_vm0 = vcmp.eq.s32.totalorder %v550_v22, %v535_v15  ;;  %vm199_vm1 = vcmp.eq.s32.totalorder %v552_v23, %v535_v15  ;;  %v294_v34 = vand.u32 65535, %v234_v10 }
  0x38   :  { %v297_v33 = vcvt.s32.f32 %v295_v26  ;;  %v147_v35 = vadd.s32 %v140_v30, %v125_v28  ;;  %v184_v36 = vsel %vm177_vm0, 1, %v502_v25  ;;  %v206_v14 = vsel %vm199_vm1, 1, %v502_v25 }
  0x39   :  { %v233_v37 = vadd.s32 %v226_v27, %v211_v31  ;;  %vm221_vm2 = vcmp.eq.s32.totalorder %v554_v24, %v535_v15  ;;  %vm75_vm3 = vcmp.eq.s32.totalorder %v540_v17, %v538_v16  ;;  %vm90_vm4 = vcmp.eq.s32.totalorder %v542_v18, %v538_v16 }
  0x3a   :  { %300 = vadd.xlane.f32.xlu2 %v297_v33  ;;  %v169_v38 = vadd.s32 %v162_v32, %v147_v35  ;;  %v228_v39 = vsel %vm221_vm2, 1, %v502_v25  ;;  %v82_v40 = vsel %vm75_vm3, 1, %v502_v25  ;;  %v97_v43 = vsel %vm90_vm4, 1, %v502_v25 }
  0x3b   :  { %v283_v41 = vshrl.u32 %v233_v37, 16  ;;  %v282_v42 = vand.u32 65535, %v233_v37  ;;  %vm112_vm5 = vcmp.eq.s32.totalorder %v544_v19, %v538_v16  ;;  %v104_v44 = vadd.s32 %v97_v43, %v82_v40 }
  0x3c   :  { %v191_v15 = vadd.s32 %v184_v36, %v169_v38  ;;  %v119_v45 = vsel %vm112_vm5, 1, %v502_v25  ;;  %vm134_vm6 = vcmp.eq.s32.totalorder %v546_v20, %v538_v16  ;;  %vm156_vm7 = vcmp.eq.s32.totalorder %v548_v21, %v538_v16 }
  0x3d   :  { %v285_v46 = vcvt.s32.f32 %v283_v41  ;;  %v284_v47 = vcvt.s32.f32 %v282_v42  ;;  %v141_v48 = vsel %vm134_vm6, 1, %v502_v25  ;;  %v296_v49 = vcvt.s32.f32 %v294_v34 }
  0x3e   :  { %v213_v50 = vadd.s32 %v206_v14, %v191_v15  ;;  %v126_v51 = vadd.s32 %v119_v45, %v104_v44  ;;  %vm178_vm8 = vcmp.eq.s32.totalorder %v550_v22, %v538_v16  ;;  %v163_v52 = vsel %vm156_vm7, 1, %v502_v25 }
  0x3f   :  { %288 = vadd.xlane.f32.xlu0 %v285_v46  ;;  %286 = vadd.xlane.f32.xlu1 %v284_v47  ;;  %v185_v53 = vsel %vm178_vm8, 1, %v502_v25  ;;  %vm200_vm9 = vcmp.eq.s32.totalorder %v552_v23, %v538_v16  ;;  %vm76_vm10 = vcmp.eq.s32.totalorder %v540_v17, %v568_v29  ;;  %vm222_vm11 = vcmp.eq.s32.totalorder %v554_v24, %v538_v16 }
  0x40   :  { %v235_v54 = vadd.s32 %v228_v39, %v213_v50  ;;  %v148_v55 = vadd.s32 %v141_v48, %v126_v51  ;;  %v207_v56 = vsel %vm200_vm9, 1, %v502_v25  ;;  %v83_v57 = vsel %vm76_vm10, 1, %v502_v25 }
  0x41   :  { %vm91_vm12 = vcmp.eq.s32.totalorder %v542_v18, %v568_v29  ;;  %vm113_vm13 = vcmp.eq.s32.totalorder %v544_v19, %v568_v29  ;;  %vm135_vm14 = vcmp.eq.s32.totalorder %v546_v20, %v568_v29  ;;  %v229_v62 = vsel %vm222_vm11, 1, %v502_v25 }
  0x42   :  { %298 = vadd.xlane.f32.xlu2 %v296_v49  ;;  %v307_v58 = vshrl.u32 %v235_v54, 16  ;;  %v306_v59 = vand.u32 65535, %v235_v54  ;;  %v170_v60 = vadd.s32 %v163_v52, %v148_v55  ;;  %v98_v61 = vsel %vm91_vm12, 1, %v502_v25 }
  0x43   :  { %v105_v16 = vadd.s32 %v98_v61, %v83_v57  ;;  %v120_v63 = vsel %vm113_vm13, 1, %v502_v25  ;;  %vm157_vm15 = vcmp.eq.s32.totalorder %v548_v21, %v568_v29  ;;  %v142_v3 = vsel %vm135_vm14, 1, %v502_v25 }
  0x44   :  { %v309_v0 = vcvt.s32.f32 %v307_v58  ;;  %v308_v1 = vcvt.s32.f32 %v306_v59  ;;  %v192_v2 = vadd.s32 %v185_v53, %v170_v60  ;;  %vm179_vm0 = vcmp.eq.s32.totalorder %v550_v22, %v568_v29 }
  0x45   :  { %v127_v4 = vadd.s32 %v120_v63, %v105_v16  ;;  %vm201_vm1 = vcmp.eq.s32.totalorder %v552_v23, %v568_v29  ;;  %vm223_vm2 = vcmp.eq.s32.totalorder %v554_v24, %v568_v29  ;;  %v164_v6 = vsel %vm157_vm15, 1, %v502_v25 }
  0x46   :  { %v214_v5 = vadd.s32 %v207_v56, %v192_v2  ;;  %v59_v8 = vadd.s32 48, %v526_v9  ;;  %v186_v11 = vsel %vm179_vm0, 1, %v502_v25  ;;  %v208_v12 = vsel %vm201_vm1, 1, %v502_v25 }
  0x47   :  { %312 = vadd.xlane.f32.xlu0 %v309_v0  ;;  %310 = vadd.xlane.f32.xlu1 %v308_v1  ;;  %v149_v7 = vadd.s32 %v142_v3, %v127_v4  ;;  %v230_v13 = vsel %vm223_vm2, 1, %v502_v25  ;;  %vm368_vm11 = vcmask 7168  }
  0x48   :  { %v236_v10 = vadd.s32 %v229_v62, %v214_v5  ;;  %vm77_vm3 = vcmp.eq.s32.totalorder %v540_v17, %v59_v8  ;;  %vm92_vm4 = vcmp.eq.s32.totalorder %v542_v18, %v59_v8  ;;  %vm114_vm5 = vcmp.eq.s32.totalorder %v544_v19, %v59_v8 }
  0x49   :  { %v171_v26 = vadd.s32 %v164_v6, %v149_v7  ;;  %v84_v28 = vsel %vm77_vm3, 1, %v502_v25  ;;  %v99_v9 = vsel %vm92_vm4, 1, %v502_v25  ;;  %v121_v32 = vsel %vm114_vm5, 1, %v502_v25 }
  0x4a   :  { %v319_v29 = vshrl.u32 %v236_v10, 16  ;;  %v318_v27 = vand.u32 65535, %v236_v10  ;;  %v106_v31 = vadd.s32 %v99_v9, %v84_v28  ;;  %vm136_vm6 = vcmp.eq.s32.totalorder %v546_v20, %v59_v8 }
  0x4b   :  { %v193_v30 = vadd.s32 %v186_v11, %v171_v26  ;;  %v143_v17 = vsel %vm136_vm6, 1, %v502_v25  ;;  %vm158_vm7 = vcmp.eq.s32.totalorder %v548_v21, %v59_v8  ;;  %vm180_vm8 = vcmp.eq.s32.totalorder %v550_v22, %v59_v8 }
  0x4c   :  { %v321_v33 = vcvt.s32.f32 %v319_v29  ;;  %v320_v34 = vcvt.s32.f32 %v318_v27  ;;  %v128_v19 = vadd.s32 %v121_v32, %v106_v31  ;;  %v165_v35 = vsel %vm158_vm7, 1, %v502_v25 }
  0x4d   :  { %v215_v18 = vadd.s32 %v208_v12, %v193_v30  ;;  %vm202_vm9 = vcmp.eq.s32.totalorder %v552_v23, %v59_v8  ;;  %v187_v20 = vsel %vm180_vm8, 1, %v502_v25  ;;  %vm224_vm10 = vcmp.eq.s32.totalorder %v554_v24, %v59_v8 }
  0x4e   :  { %324 = vadd.xlane.f32.xlu2 %v321_v33  ;;  %v150_v37 = vadd.s32 %v143_v17, %v128_v19  ;;  %v209_v21 = vsel %vm202_vm9, 1, %v502_v25  ;;  %v231_v42 = vsel %vm224_vm10, 1, %v502_v25 }
  0x4f   :  { %322 = vadd.xlane.f32.xlu0 %v320_v34  ;;  %v237_v36 = vadd.s32 %v230_v13, %v215_v18 }
  0x50   :  { %v172_v39 = vadd.s32 %v165_v35, %v150_v37 }
  0x51   :  { %v331_v14 = vshrl.u32 %v237_v36, 16  ;;  %v330_v38 = vand.u32 65535, %v237_v36 }
  0x52   :  { %v194_v22 = vadd.s32 %v187_v20, %v172_v39 }
  0x53   :  { %v333_v40 = vcvt.s32.f32 %v331_v14  ;;  %v332_v41 = vcvt.s32.f32 %v330_v38 }
  0x54   :  { %v216_v43 = vadd.s32 %v209_v21, %v194_v22 }
  0x55   :  { %336 = vadd.xlane.f32.xlu1 %v333_v40 }
  0x56   :  { %334 = vadd.xlane.f32.xlu2 %v332_v41  ;;  %v238_v15 = vadd.s32 %v231_v42, %v216_v43 }
  0x58   :  { %v343_v44 = vshrl.u32 %v238_v15, 16  ;;  %v342_v23 = vand.u32 65535, %v238_v15 }
  0x5a   :  { %v345_v45 = vcvt.s32.f32 %v343_v44  ;;  %v344_v46 = vcvt.s32.f32 %v342_v23 }
  0x5c   :  { %348 = vadd.xlane.f32.xlu0 %v345_v45 }
  0x5d   :  { %346 = vadd.xlane.f32.xlu1 %v344_v46 }
  0xa9   :  { %v277_v47 = vpop.xlane.xlu0 %276  ;;  %v275_v48 = vpop.xlane.xlu1 %274 }
  0xaa   :  { %v279_v53 = vcvt.f32.s32 %v277_v47  ;;  %v278_v57 = vcvt.f32.s32 %v275_v48 }
  0xac   :  { %v280_v56 = vshll.u32 %v279_v53, 16 }
  0xad   :  { %v301_v24 = vpop.xlane.xlu2 %300 }
  0xae   :  { %v303_v58 = vcvt.f32.s32 %v301_v24  ;;  %v281_v62 = vadd.s32 %v280_v56, %v278_v57  ;;  %v503_v57 = vmov 0.6931472  }
  0xaf   :  { %442 = vrcp.f32 %v503_v57 }
  0xb0   :  { %v304_v16 = vshll.u32 %v303_v58, 16  ;;  %v354_v8 = vcvt.s32.f32 %v281_v62 }
  0xb2   :  { %v289_v49 = vpop.xlane.xlu0 %288  ;;  %v287_v50 = vpop.xlane.xlu1 %286  ;;  %v361_v29 = vmul.f32 %v354_v8, %v354_v8 }
  0xb3   :  { %v291_v51 = vcvt.f32.s32 %v289_v49  ;;  %v290_v55 = vcvt.f32.s32 %v287_v50 }
  0xb4   :  { %v369_v17 = vsel %vm368_vm11, %v361_v29, 0.0 }
  0xb5   :  { %v299_v52 = vpop.xlane.xlu2 %298  ;;  %v292_v25 = vshll.u32 %v291_v51, 16  ;;  %v443_v58 = vpop.eup %442 }
  0xb6   :  { %v302_v63 = vcvt.f32.s32 %v299_v52  ;;  %vm401_vm12 = vweird.f32 %v443_v58 }
  0xb7   :  { %v293_v61 = vadd.s32 %v292_v25, %v290_v55 }
  0xb8   :  { %v305_v10 = vadd.s32 %v304_v16, %v302_v63 }
  0xb9   :  { %v355_v5 = vcvt.s32.f32 %v293_v61 }
  0xba   :  { %v313_v54 = vpop.xlane.xlu0 %312  ;;  %v311_v60 = vpop.xlane.xlu1 %310  ;;  %v356_v27 = vcvt.s32.f32 %v305_v10 }
  0xbb   :  { %v315_v59 = vcvt.f32.s32 %v313_v54  ;;  %v314_v1 = vcvt.f32.s32 %v311_v60  ;;  %v362_v12 = vmul.f32 %v355_v5, %v355_v5 }
  0xbc   :  { %v363_v18 = vmul.f32 %v356_v27, %v356_v27 }
  0xbd   :  { %v316_v0 = vshll.u32 %v315_v59, 16  ;;  %v370_v32 = vsel %vm368_vm11, %v362_v12, 0.0  ;;  %v397_v59 = vmul.f32 0.6931472, %v443_v58 }
  0xbe   :  { %v371_v36 = vadd.f32 %v370_v32, %v369_v17  ;;  %v372_v39 = vsel %vm368_vm11, %v363_v18, 0.0 }
  0xbf   :  { %v317_v11 = vadd.s32 %v316_v0, %v314_v1  ;;  %v398_v60 = vsub.f32 1.0, %v397_v59 }
  0xc0   :  { %v373_v22 = vadd.f32 %v372_v39, %v371_v36 }
  0xc1   :  { %v325_v2 = vpop.xlane.xlu2 %324  ;;  %v357_v28 = vcvt.s32.f32 %v317_v11  ;;  %v399_v62 = vmul.f32 %v443_v58, %v398_v60 }
  0xc2   :  { %v327_v3 = vcvt.f32.s32 %v325_v2  ;;  %v323_v4 = vpop.xlane.xlu0 %322 }
  0xc3   :  { %v326_v6 = vcvt.f32.s32 %v323_v4  ;;  %v364_v19 = vmul.f32 %v357_v28, %v357_v28  ;;  %v400_v16 = vadd.f32 %v443_v58, %v399_v62 }
  0xc4   :  { %v328_v7 = vshll.u32 %v327_v3, 16 }
  0xc5   :  { %v374_v21 = vsel %vm368_vm11, %v364_v19, 0.0  ;;  %v402_v1 = vsel %vm401_vm12, %v443_v58, %v400_v16 }
  0xc6   :  { %v329_v13 = vadd.s32 %v328_v7, %v326_v6  ;;  %v375_v44 = vadd.f32 %v374_v21, %v373_v22 }
  0xc8   :  { %v337_v26 = vpop.xlane.xlu1 %336  ;;  %v358_v33 = vcvt.s32.f32 %v329_v13 }
  0xc9   :  { %v339_v9 = vcvt.f32.s32 %v337_v26  ;;  %v335_v30 = vpop.xlane.xlu2 %334 }
  0xca   :  { %v338_v31 = vcvt.f32.s32 %v335_v30  ;;  %v365_v37 = vmul.f32 %v358_v33, %v358_v33 }
  0xcb   :  { %v340_v34 = vshll.u32 %v339_v9, 16 }
  0xcc   :  { %v376_v42 = vsel %vm368_vm11, %v365_v37, 0.0 }
  0xcd   :  { %v341_v35 = vadd.s32 %v340_v34, %v338_v31  ;;  %v377_v45 = vadd.f32 %v376_v42, %v375_v44 }
  0xcf   :  { %v359_v20 = vcvt.s32.f32 %v341_v35  ;;  %v349_v14 = vpop.xlane.xlu0 %348 }
  0xd0   :  { %v347_v38 = vpop.xlane.xlu1 %346  ;;  %v351_v40 = vcvt.f32.s32 %v349_v14 }
  0xd1   :  { %v350_v41 = vcvt.f32.s32 %v347_v38  ;;  %v366_v43 = vmul.f32 %v359_v20, %v359_v20 }
  0xd2   :  { %v352_v15 = vshll.u32 %v351_v40, 16 }
  0xd3   :  { %v378_v47 = vsel %vm368_vm11, %v366_v43, 0.0 }
  0xd4   :  { %v353_v23 = vadd.s32 %v352_v15, %v350_v41  ;;  %v379_v24 = vadd.f32 %v378_v47, %v377_v45 }
  0xd6   :  { %v360_v46 = vcvt.s32.f32 %v353_v23 }
  0xd8   :  { %v367_v48 = vmul.f32 %v360_v46, %v360_v46 }
  0xda   :  { %v380_v49 = vsel %vm368_vm11, %v367_v48, 0.0 }
  0xdb   :  { %v381_v50 = vadd.f32 %v380_v49, %v379_v24 }
  0xdd   :  { %382 = vadd.xlane.f32.xlu2 %v381_v50 }
 0x150   :  { %v383_v51 = vpop.xlane.xlu2 %382 }
 0x151   :  { %v384_v52 = vrot.slane %v383_v51, 4 }
 0x153   :  { %v385_v53 = vadd.f32 %v384_v52, %v383_v51 }
 0x155   :  { %v386_v54 = vrot.slane %v385_v53, 2 }
 0x157   :  { %v387_v25 = vadd.f32 %v386_v54, %v385_v53 }
 0x159   :  { %v388_v55 = vrot.slane %v387_v25, 1 }
 0x15b   :  { %v389_v56 = vadd.f32 %v388_v55, %v387_v25 }
 0x15d   :  { %431 = vpush %v389_v56 }
 0x18e   :  { %s432_s0 = spop %431 }
 0x18f   :  { %s391_s1 = smul.f32 9.536743e-07, %s432_s0 }
 0x191   :  { %v392_v61 = vstv %s391_s1 }
 0x192   :  { %444 = vlog2.f32 %v392_v61 }
 0x198   :  { %v445_v63 = vpop.eup %444 }
 0x199   :  { %v394_v0 = vmul.f32 0.6931472, %v445_v63 }
 0x19b   :  { %433 = vpush %v394_v0 }
 0x19c   :  { %435 = vpush %v402_v1 }
 0x1cc   :  { %s434_s20 = spop %433 }
 0x1cd   :  { %s436_s24 = spop %435 }
 0x1ce   :  { %s404_s25 = smul.f32 %s436_s24, %s434_s20 }
 0x1d0   :  { %s405_s26 = smul.f32 -1.0, %s404_s25 }
 0x1d2   :  { %407 = sst [smem:[#allocation8]] %s405_s26 }
 0x1d3   :  { %416 = dma.smem_to_hbm %s504_s27, 16, %s414_s23, [#allocation6]  }
 0x1d4   :  { %498 = dma.done.wait [#allocation6], 16  }
 0x1d5   :  { %499 = vsyncadd [#allocation6], 4294967280 }
 0x1d6   :  { %421 = sfence }
 0x1d7   :  { %422 = vsyncpa [#allocation4], 1 }
 0x1d8   :  { %423 = vsyncpa [#allocation5], 1 }
 0x1d9   :  { %424 = vsyncpa [#allocation6], 1 }

</bundles_post_ra>
